<compile_context>
chip_gen: v6e
topology: v6e:2x2x1
jax: 0.10.0
libtpu: 0.0.40
codegen_flags: <defaults>
</compile_context>

<pallas_src>
import functools
import inspect

import jax
import jax.numpy as jnp
from jax.experimental import pallas as pl
from jax.experimental.pallas import tpu as pltpu

_LANE = 128      # lane width / MXU column granularity
_SUBLANE = 8     # sublane granularity for the second-minor dim

try:
    _HAS_PIPELINE_MODE = (
        hasattr(pl, "Buffered")
        and "pipeline_mode" in inspect.signature(pl.BlockSpec).parameters)
except Exception:  # pragma: no cover - very old jax
    _HAS_PIPELINE_MODE = False


def _round_up(x, m):
    return (x + m - 1) // m * m


def _itemsize(a):
    return jnp.dtype(a.dtype).itemsize


def _vmem_capacity_bytes():
    """Physical VMEM of the attached chip; conservative fallback if unknown."""
    try:
        return int(pltpu.get_tpu_info().vmem_capacity_bytes)
    except Exception:
        return 64 << 20  # v7x per-TensorCore VMEM (smallest of the three gens)


def _spec(shape, index_map, *, single_buffered=False):
    """BlockSpec; constant-index (resident) operands get a single VMEM buffer."""
    if single_buffered and _HAS_PIPELINE_MODE:
        return pl.BlockSpec(shape, index_map, pipeline_mode=pl.Buffered(1))
    return pl.BlockSpec(shape, index_map)


def _pick_k_chunk(in_dim, target):
    """Largest multiple of 128 that divides in_dim and is <= target."""
    tk = max(_LANE, min(int(target), in_dim))
    tk = (tk // _LANE) * _LANE
    while in_dim % tk != 0:
        tk -= _LANE
    return tk


# --------------------------------------------------------------------------
# Kernels
# --------------------------------------------------------------------------
def _resident_kernel(precision, x_ref, w1_ref, b1_ref, w2_ref, b2_ref, o_ref):
    # fc1: (TM, D_in) @ (D_in, D_in) on the MXU, f32 accumulation.
    h = jnp.dot(x_ref[...], w1_ref[...],
                preferred_element_type=jnp.float32, precision=precision)
    # bias + ReLU + (possible) downcast for fc2 fused into one VPU pass.
    h = jnp.maximum(h + b1_ref[...], 0.0).astype(w2_ref.dtype)
    # fc2: (TM, D_in) @ (D_in, D_out_padded), f32 accumulation.
    out = jnp.dot(h, w2_ref[...],
                  preferred_element_type=jnp.float32, precision=precision)
    o_ref[...] = (out + b2_ref[...]).astype(o_ref.dtype)


def _chunked_kernel(precision, x_ref, w1_ref, b1_ref, w2_ref, b2_ref, o_ref,
                    acc_ref):
    """K-chunked variant: grid=(batch_tiles, in_dim//tk).

    Per k step: compute a (TM, tk) slice of relu(fc1(x)) and accumulate its fc2
    contribution into an f32 VMEM accumulator; finalize (bias + cast) at k==last.
    """
    k = pl.program_id(1)

    @pl.when(k == 0)
    def _():
        acc_ref[...] = jnp.zeros_like(acc_ref)

    h = jnp.dot(x_ref[...], w1_ref[...],
                preferred_element_type=jnp.float32, precision=precision)
    h = jnp.maximum(h + b1_ref[...], 0.0).astype(w2_ref.dtype)
    acc_ref[...] += jnp.dot(h, w2_ref[...],
                            preferred_element_type=jnp.float32,
                            precision=precision)

    @pl.when(k == pl.num_programs(1) - 1)
    def _():
        o_ref[...] = (acc_ref[...] + b2_ref[...]).astype(o_ref.dtype)


# --------------------------------------------------------------------------
# Parameter preparation (one-time, at setup)
# --------------------------------------------------------------------------
def prepare_projector_params(w1, b1, w2, b2, *, compute_dtype=jnp.bfloat16):
    """One-time conversion from PyTorch nn.Linear layout to kernel layout.

    Args:
      w1: (in_dim, in_dim)  PyTorch Linear weight (out, in)
      b1: (in_dim,)
      w2: (out_dim, in_dim) PyTorch Linear weight (out, in)
      b2: (out_dim,)
      compute_dtype: matmul input dtype. Defaults to bfloat16 (MXU-native on all
        TPU generations); pass jnp.float32 for exact f32 inputs. Biases and MXU
        accumulation are always f32.
    """
    w1 = jnp.asarray(w1)
    w2 = jnp.asarray(w2)
    in_dim = w1.shape[1]
    out_dim = w2.shape[0]
    out_p = _round_up(out_dim, _LANE)

    wd = jnp.dtype(compute_dtype)

    # Pre-transpose to (in, out) so the kernel does plain x @ W.
    w1_t = w1.T.astype(wd)                                        # (in, in)
    w2_t = jnp.zeros((in_dim, out_p), wd).at[:, :out_dim].set(w2.T.astype(wd))
    b1_2d = jnp.asarray(b1, jnp.float32).reshape(1, in_dim)
    # Padded bias lanes are zero so they cannot pollute real columns.
    b2_2d = jnp.zeros((1, out_p), jnp.float32).at[:, :out_dim].set(
        jnp.asarray(b2, jnp.float32))

    return {"w1": w1_t, "b1": b1_2d, "w2": w2_t, "b2": b2_2d,
            "in_dim": in_dim, "out_dim": out_dim}


# --------------------------------------------------------------------------
# Forward wrapper
# --------------------------------------------------------------------------
def projector_simclr(x, params, *, tm_target=512, k_chunk=None, precision=None):
    """Pallas forward of projector_SIMCLR: fc2(relu(fc1(x))).

    Args:
      x: (B, in_dim)
      params: output of prepare_projector_params.
      tm_target: desired batch tile (rows per grid step).
      k_chunk: optional chunk width (multiple of 128 dividing in_dim) to force
        the K-chunked plan; by default it is chosen automatically when the
        resident weight set would crowd VMEM.
      precision: optional jax.lax.Precision for the matmuls (None = MXU default).
    Returns:
      (B, out_dim) in x.dtype.
    """
    w1, b1, w2, b2 = params["w1"], params["b1"], params["w2"], params["b2"]
    in_dim, out_dim = params["in_dim"], params["out_dim"]
    out_p = w2.shape[1]

    B = x.shape[0]
    out_dtype = x.dtype
    xd = x if x.dtype == w1.dtype else x.astype(w1.dtype)

    # ---- batch tile: multiple of 8 sublanes, capped at tm_target; no padded copy
    # of x is made - Pallas clips the partial last block (B need not divide tm). ----
    tm = min(tm_target, _round_up(B, _SUBLANE))
    tm = _round_up(tm, _SUBLANE)
    grid_m = int(pl.cdiv(B, tm))
    # v7x has 2 TensorCores: a single-step "parallel" grid would idle one of them.
    if grid_m < 2 and tm > _SUBLANE:
        tm = _round_up(max(tm // 2, _SUBLANE), _SUBLANE)
        grid_m = int(pl.cdiv(B, tm))

    cap = _vmem_capacity_bytes()
    w_bytes = (w1.size * _itemsize(w1) + w2.size * _itemsize(w2)
               + b1.size * _itemsize(b1) + b2.size * _itemsize(b2))
    x_tile_bytes = tm * in_dim * _itemsize(xd)
    o_tile_bytes = tm * out_p * jnp.dtype(out_dtype).itemsize

    # ---- plan selection: fully weight-resident vs K-chunked ----
    weight_budget = cap // 4  # ~16 MiB on v7x, ~32 MiB on v5e/v6e
    tk = None
    if (k_chunk is not None or w_bytes > weight_budget) and in_dim % _LANE == 0:
        cand = _pick_k_chunk(in_dim, k_chunk if k_chunk is not None else 512)
        if cand < in_dim:
            tk = cand

    if tk is None:
        # -------- resident-weight plan --------
        w_copies = 1 if _HAS_PIPELINE_MODE else 2
        resident = w_copies * w_bytes + 2 * (x_tile_bytes + o_tile_bytes)
        grid = (grid_m,)
        dim_sem = ("parallel",)
        kernel = functools.partial(_resident_kernel, precision)
        in_specs = [
            pl.BlockSpec((tm, in_dim), lambda i: (i, 0)),                       # x
            _spec((in_dim, in_dim), lambda i: (0, 0), single_buffered=True),    # w1
            _spec((1, in_dim), lambda i: (0, 0), single_buffered=True),         # b1
            _spec((in_dim, out_p), lambda i: (0, 0), single_buffered=True),     # w2
            _spec((1, out_p), lambda i: (0, 0), single_buffered=True),          # b2
        ]
        out_specs = pl.BlockSpec((tm, out_p), lambda i: (i, 0))
        scratch_shapes = []
        weight_hbm_reads = w_bytes          # weights fetched once
    else:
        # -------- K-chunked plan (wide in_dim / tight VMEM, e.g. v7x) --------
        grid_k = in_dim // tk
        resident = (2 * (in_dim * tk * _itemsize(w1) + tk * out_p * _itemsize(w2)
                         + tk * _itemsize(b1))
                    + out_p * _itemsize(b2)
                    + 2 * (x_tile_bytes + o_tile_bytes)
                    + tm * out_p * 4)
        grid = (grid_m, grid_k)
        dim_sem = ("parallel", "arbitrary")
        kernel = functools.partial(_chunked_kernel, precision)
        in_specs = [
            pl.BlockSpec((tm, in_dim), lambda i, k: (i, 0)),                    # x
            pl.BlockSpec((in_dim, tk), lambda i, k: (0, k)),                    # w1 cols
            pl.BlockSpec((1, tk), lambda i, k: (0, k)),                         # b1 cols
            pl.BlockSpec((tk, out_p), lambda i, k: (k, 0)),                     # w2 rows
            _spec((1, out_p), lambda i, k: (0, 0), single_buffered=True),       # b2
        ]
        out_specs = pl.BlockSpec((tm, out_p), lambda i, k: (i, 0))
        scratch_shapes = [pltpu.VMEM((tm, out_p), jnp.float32)]
        weight_hbm_reads = grid_m * w_bytes  # chunks re-streamed per batch tile

    # ---- compiler params: raise scoped VMEM only when needed, clamped to the
    # chip's physical capacity minus headroom (v5e default limit is only 16 MiB). ----
    cp_kwargs = {"dimension_semantics": dim_sem}
    if resident > (12 << 20):
        limit = max(int(resident * 5 // 4), 32 << 20)
        limit = min(limit, cap - (4 << 20))
        cp_kwargs["vmem_limit_bytes"] = int(limit)

    # Advisory cost estimate for XLA's scheduler.
    flops = 2 * B * in_dim * in_dim + 2 * B * in_dim * out_p
    bytes_accessed = (xd.size * _itemsize(xd) + weight_hbm_reads
                      + B * out_p * jnp.dtype(out_dtype).itemsize)
    cost = pl.CostEstimate(flops=flops, transcendentals=0,
                           bytes_accessed=bytes_accessed)

    out = pl.pallas_call(
        kernel,
        out_shape=jax.ShapeDtypeStruct((B, out_p), out_dtype),
        grid_spec=pltpu.PrefetchScalarGridSpec(
            num_scalar_prefetch=0,
            grid=grid,
            in_specs=in_specs,
            out_specs=out_specs,
            scratch_shapes=scratch_shapes,
        ),
        compiler_params=pltpu.CompilerParams(**cp_kwargs),
        cost_estimate=cost,
    )(xd, w1, b1, w2, b2)

    return out if out_p == out_dim else out[:, :out_dim]


# --------------------------------------------------------------------------
# Test harness
# --------------------------------------------------------------------------
def _init_linear(key, out_features, in_features, dtype=jnp.float32):
    """Deterministic init mimicking nn.Linear default (uniform +/- 1/sqrt(fan_in))."""
    kw, kb = jax.random.split(key)
    bound = 1.0 / jnp.sqrt(jnp.array(in_features, dtype))
    w = jax.random.uniform(kw, (out_features, in_features), dtype,
                           minval=-bound, maxval=bound)
    b = jax.random.uniform(kb, (out_features,), dtype,
                           minval=-bound, maxval=bound)
    return w, b


def _ref_forward(x, w1, b1, w2, b2):
    return jnp.maximum(x @ w1.T + b1, 0.0) @ w2.T + b2


if __name__ == "__main__":
    # NOTE: at these toy shapes the kernel is pure launch/DMA overhead; the tiling
    # pays off at real SimCLR sizes (B in the 1000s, in_dim >= 1024).
    key = jax.random.PRNGKey(0)
    k_x, k_fc1, k_fc2, k_x2, k_x3, k_fc3, k_fc4 = jax.random.split(key, 7)

    B, in_dim, out_dim = 8, 32, 16
    x = jax.random.normal(k_x, (B, in_dim), jnp.float32)
    w1, b1 = _init_linear(k_fc1, in_dim, in_dim)
    w2, b2 = _init_linear(k_fc2, out_dim, in_dim)
    ref = _ref_forward(x, w1, b1, w2, b2)

    # --- explicit f32 compute path (exact vs reference at small K) ---
    params_f32 = prepare_projector_params(w1, b1, w2, b2,
                                          compute_dtype=jnp.float32)
    out = jax.block_until_ready(projector_simclr(x, params_f32))
    assert out.shape == (B, out_dim)
    assert jnp.allclose(out, ref, atol=1e-5, rtol=1e-5)

    # --- default bf16 compute path (f32 accumulation, loose tolerance) ---
    params_bf16 = prepare_projector_params(w1, b1, w2, b2)
    out_bf16 = jax.block_until_ready(projector_simclr(x, params_bf16))
    assert out_bf16.shape == (B, out_dim)
    assert jnp.allclose(out_bf16, ref, atol=5e-2, rtol=5e-2)

    # --- multi-step grid, B not a multiple of the tile, no wrapper-side padding ---
    B2 = 20
    x2 = jax.random.normal(k_x2, (B2, in_dim), jnp.float32)
    ref2 = _ref_forward(x2, w1, b1, w2, b2)
    out2 = jax.block_until_ready(projector_simclr(x2, params_f32))      # tm halved -> grid 2
    assert out2.shape == (B2, out_dim)
    assert jnp.allclose(out2, ref2, atol=1e-5, rtol=1e-5)
    out2b = jax.block_until_ready(projector_simclr(x2, params_f32, tm_target=8))  # grid 3
    assert jnp.allclose(out2b, ref2, atol=1e-5, rtol=1e-5)

    # --- K-chunked plan (as used for very wide in_dim / v7x VMEM), forced here ---
    B3, in_dim3, out_dim3 = 16, 256, 64
    x3 = jax.random.normal(k_x3, (B3, in_dim3), jnp.float32)
    w1c, b1c = _init_linear(k_fc3, in_dim3, in_dim3)
    w2c, b2c = _init_linear(k_fc4, out_dim3, in_dim3)
    ref3 = _ref_forward(x3, w1c, b1c, w2c, b2c)
    params_c = prepare_projector_params(w1c, b1c, w2c, b2c,
                                        compute_dtype=jnp.float32)
    out3 = jax.block_until_ready(projector_simclr(x3, params_c, k_chunk=128))
    assert out3.shape == (B3, out_dim3)
    assert jnp.allclose(out3, ref3, atol=5e-2, rtol=5e-2)

    print("KERNEL_OK")
</pallas_src>

<mosaic_0001>
module attributes {stable_mosaic.version = 11 : i64} {
  func.func @_resident_kernel(%arg0: i32, %arg1: memref<8x32xf32, #tpu.memory_space<vmem>>, %arg2: memref<32x32xf32, #tpu.memory_space<vmem>>, %arg3: memref<1x32xf32, #tpu.memory_space<vmem>>, %arg4: memref<32x128xf32, #tpu.memory_space<vmem>>, %arg5: memref<1x128xf32, #tpu.memory_space<vmem>>, %arg6: memref<8x128xf32, #tpu.memory_space<vmem>>) attributes {dimension_semantics = [#tpu.dimension_semantics<parallel>], iteration_bounds = array<i64: 1>, scalar_prefetch = 0 : i64, scratch_operands = 0 : i64, tpu.core_type = #tpu.core_type<tc>, window_params = [{transform_indices = @transform_0, window_bounds = array<i64: 8, 32>}, {pipeline_mode = #tpu.pipeline_mode<synchronous>, transform_indices = @transform_1, window_bounds = array<i64: 32, 32>}, {pipeline_mode = #tpu.pipeline_mode<synchronous>, transform_indices = @transform_2, window_bounds = array<i64: 1, 32>}, {pipeline_mode = #tpu.pipeline_mode<synchronous>, transform_indices = @transform_3, window_bounds = array<i64: 32, 128>}, {pipeline_mode = #tpu.pipeline_mode<synchronous>, transform_indices = @transform_4, window_bounds = array<i64: 1, 128>}, {transform_indices = @transform_5, window_bounds = array<i64: 8, 128>}]} {
    %c0 = arith.constant 0 : index
    %c0_0 = arith.constant 0 : index
    %0 = vector.load %arg1[%c0, %c0_0] : memref<8x32xf32, #tpu.memory_space<vmem>>, vector<8x32xf32>
    %c0_1 = arith.constant 0 : index
    %c0_2 = arith.constant 0 : index
    %1 = vector.load %arg2[%c0_1, %c0_2] : memref<32x32xf32, #tpu.memory_space<vmem>>, vector<32x32xf32>
    %cst = arith.constant dense<0.000000e+00> : vector<8x32xf32>
    %2 = tpu.matmul %0, %1, %cst {dimension_numbers = #tpu.dot_dimension_numbers<[1], [0], [0], [1], [0, 0, 1, 1], [], []>} : vector<8x32xf32>, vector<32x32xf32>, vector<8x32xf32> -> vector<8x32xf32>
    %c0_3 = arith.constant 0 : index
    %c0_4 = arith.constant 0 : index
    %3 = vector.load %arg3[%c0_3, %c0_4] : memref<1x32xf32, #tpu.memory_space<vmem>>, vector<1x32xf32>
    %4 = vector.broadcast %3 : vector<1x32xf32> to vector<8x32xf32>
    %5 = arith.addf %2, %4 : vector<8x32xf32>
    %cst_5 = arith.constant 0.000000e+00 : f32
    %6 = vector.broadcast %cst_5 : f32 to vector<8x32xf32>
    %7 = arith.maximumf %5, %6 : vector<8x32xf32>
    %c0_6 = arith.constant 0 : index
    %c0_7 = arith.constant 0 : index
    %8 = vector.load %arg4[%c0_6, %c0_7] : memref<32x128xf32, #tpu.memory_space<vmem>>, vector<32x128xf32>
    %cst_8 = arith.constant dense<0.000000e+00> : vector<8x128xf32>
    %9 = tpu.matmul %7, %8, %cst_8 {dimension_numbers = #tpu.dot_dimension_numbers<[1], [0], [0], [1], [0, 0, 1, 1], [], []>} : vector<8x32xf32>, vector<32x128xf32>, vector<8x128xf32> -> vector<8x128xf32>
    %c0_9 = arith.constant 0 : index
    %c0_10 = arith.constant 0 : index
    %10 = vector.load %arg5[%c0_9, %c0_10] : memref<1x128xf32, #tpu.memory_space<vmem>>, vector<1x128xf32>
    %11 = vector.broadcast %10 : vector<1x128xf32> to vector<8x128xf32>
    %12 = arith.addf %9, %11 : vector<8x128xf32>
    %c0_11 = arith.constant 0 : index
    %c0_12 = arith.constant 0 : index
    %13 = vector.load %arg6[%c0_11, %c0_12] : memref<8x128xf32, #tpu.memory_space<vmem>>, vector<8x128xf32>
    tpu.vector_store %arg6[%c0_11, %c0_12], %12 {strides = array<i32>} : memref<8x128xf32, #tpu.memory_space<vmem>>, vector<8x128xf32>,
    return
  }
  func.func @transform_0(%arg0: i32) -> (i32, i32) {
    %c0_i32 = arith.constant 0 : i32
    %c0_i32_0 = arith.constant 0 : i32
    return %arg0, %c0_i32 : i32, i32
  }
  func.func @transform_1(%arg0: i32) -> (i32, i32) {
    %c0_i32 = arith.constant 0 : i32
    %c0_i32_0 = arith.constant 0 : i32
    %c0_i32_1 = arith.constant 0 : i32
    return %c0_i32, %c0_i32_0 : i32, i32
  }
  func.func @transform_2(%arg0: i32) -> (i32, i32) {
    %c0_i32 = arith.constant 0 : i32
    %c0_i32_0 = arith.constant 0 : i32
    %c0_i32_1 = arith.constant 0 : i32
    return %c0_i32, %c0_i32_0 : i32, i32
  }
  func.func @transform_3(%arg0: i32) -> (i32, i32) {
    %c0_i32 = arith.constant 0 : i32
    %c0_i32_0 = arith.constant 0 : i32
    %c0_i32_1 = arith.constant 0 : i32
    return %c0_i32, %c0_i32_0 : i32, i32
  }
  func.func @transform_4(%arg0: i32) -> (i32, i32) {
    %c0_i32 = arith.constant 0 : i32
    %c0_i32_0 = arith.constant 0 : i32
    %c0_i32_1 = arith.constant 0 : i32
    return %c0_i32, %c0_i32_0 : i32, i32
  }
  func.func @transform_5(%arg0: i32) -> (i32, i32) {
    %c0_i32 = arith.constant 0 : i32
    %c0_i32_0 = arith.constant 0 : i32
    return %arg0, %c0_i32 : i32, i32
  }
}

</mosaic_0001>

<bundles_post_ra>
// kernel: tpu_custom_call.1
= control target key start
LH: loop header
LB: loop body
LE: loop exit
PB: predicated region body
PF: predicated region fallthrough
CT: control target
= control target key end

     0   :  { %10 = vsyncpa [#allocation3], 0  ;;  %s436_s0 = inlined_call_operand.hbm [shape: f32[8,32], index: 0, kind: input, shape index: {}]   ;;  %s437_s1 = inlined_call_operand.hbm [shape: f32[32,32], index: 1, kind: input, shape index: {}]   ;;  %s438_s2 = inlined_call_operand.vmem [shape: f32[1,32], index: 2, kind: input, shape index: {}]   ;;  %s439_s3 = inlined_call_operand.hbm [shape: f32[32,128], index: 3, kind: input, shape index: {}]   ;;  %s440_s4 = inlined_call_operand.vmem [shape: f32[1,128], index: 4, kind: input, shape index: {}]   ;;  %s441_s5 = inlined_call_operand.hbm [shape: f32[8,128], index: 5, kind: output, shape index: {}]  }
   0x1   :  { %11 = vsyncpa [#allocation6], 0 }
   0x2   :  { %12 = vsyncpa [#allocation4], 0  ;;  %s378_s18 = smov [#allocation5]  }
   0x3   :  { %s28_s19 = sshll.u32 %s378_s18, 4  ;;  %s29_s19 = int_to_ptr.vmem [resolvable:$true] %s28_s19 }
   0x4   :  { %s300_s20 = scalar_lea.vmem %s29_s19, 512  ;;  %p305_p1 = scmp.lt.s32.totalorder %s29_s19, %s29_s19 }
   0x5   :  { %p301_p0 = scmp.ne.s32.totalorder %s29_s19, %s300_s20  ;;  %p306_p2 = scmp.lt.s32.totalorder %s300_s20, %s300_s20 }
   0x7   :  { %p307_p3 = por %p306_p2, %p305_p1 }
   0x9   :  { %p308_p4 = pnand %p307_p3, %p301_p0 }
   0xb   :  { %311 = shalt.err (!%p308_p4)
}
   0xc   :  { %s379_s21 = smov 128   ;;  %s380_s22 = smov 8  }
   0xd   :  { %34 = dma.hbm_to_vmem [thread:$0]  %s437_s1, 512, %s29_s19, [#allocation6], %s379_s21, %s379_s21, %s380_s22  }
   0xe   :  { %s381_s25 = smov [#allocation2]   ;;  %s382_s27 = smov [#allocation7]  }
   0xf   :  { %s19_s26 = sshll.u32 %s381_s25, 4  ;;  %s42_s28 = sshll.u32 %s382_s27, 4  ;;  %s20_s26 = int_to_ptr.vmem [resolvable:$true] %s19_s26  ;;  %s43_s28 = int_to_ptr.vmem [resolvable:$true] %s42_s28 }
  0x10   :  { %s320_s29 = scalar_lea.vmem %s20_s26, 128  ;;  %p325_p6 = scmp.lt.s32.totalorder %s20_s26, %s20_s26 }
  0x11   :  { %p321_p5 = scmp.ne.s32.totalorder %s20_s26, %s320_s29  ;;  %p326_p7 = scmp.lt.s32.totalorder %s320_s29, %s320_s29 }
  0x13   :  { %p327_p8 = por %p326_p7, %p325_p6 }
  0x15   :  { %p328_p9 = pnand %p327_p8, %p321_p5 }
  0x17   :  { %331 = shalt.err (!%p328_p9)
}
  0x18   :  { %22 = dma.hbm_to_vmem [thread:$0]  %s436_s0, 128, %s20_s26, [#allocation3]  }
  0x19   :  { %s340_s7 = scalar_lea.vmem %s43_s28, 512  ;;  %p345_p11 = scmp.lt.s32.totalorder %s43_s28, %s43_s28 }
  0x1a   :  { %p341_p10 = scmp.ne.s32.totalorder %s43_s28, %s340_s7  ;;  %p346_p12 = scmp.lt.s32.totalorder %s340_s7, %s340_s7 }
  0x1c   :  { %p347_p13 = por %p346_p12, %p345_p11 }
  0x1e   :  { %p348_p0 = pnand %p347_p13, %p341_p10 }
  0x20   :  { %351 = shalt.err (!%p348_p0)
}
  0x21   :  { %48 = dma.hbm_to_vmem [thread:$0]  %s439_s3, 512, %s43_s28, [#allocation6], %s379_s21, %s379_s21, %s380_s22  }
  0x22   :  { %372 = dma.done.wait [#allocation3], 128  }
  0x23   :  { %373 = vsyncadd [#allocation3], 4294967168 }
  0x24   :  { %374 = dma.done.wait [#allocation6], 1024  }
  0x25   :  { %375 = vsyncadd [#allocation6], 4294966272  ;;  %v383_v0 = vmov 0.0   ;;  %vm384_vm0 = vmmov 0   ;;  %v64_v1 = vld [vmem:[#allocation5 + $0x18] sm:$0xff]  ;;  %v63_v2 = vld [vmem:[#allocation5 + $0x10] sm:$0xff] }
  0x26   :  { %262 = vmatprep.subr.mxu0 %v383_v0  ;;  %270 = vmatprep.mubr.msk.f32.mxu0 %vm384_vm0, %v383_v0  ;;  %v150_v3 = vld [vmem:[#allocation7 + $0x18] sm:$0xff]  ;;  %v62_v4 = vld [vmem:[#allocation5 + $0x8] sm:$0xff]  ;;  %v61_v5 = vld [vmem:[#allocation5] sm:$0xff]  ;;  %vm72_vm1 = vcmask 261120   ;;  %s385_s11 = smov [#allocation8]  }
  0x27   :  { %273 = vmatprep.subr.mxu1 %v383_v0  ;;  %281 = vmatprep.mubr.msk.f32.mxu1 %vm384_vm0, %v383_v0  ;;  %v60_v6 = vld [vmem:[#allocation2] sm:$0xff]  ;;  %v149_v7 = vld [vmem:[#allocation7 + $0x10] sm:$0xff]  ;;  %v148_v8 = vld [vmem:[#allocation7 + $0x8] sm:$0xff]  ;;  %s238_s12 = sshll.u32 %s385_s11, 4  ;;  %s239_s12 = int_to_ptr.vmem [resolvable:$true] %s238_s12 }
  0x28   :  { %263 = vmatpush3.msra.mxu0 %v64_v1  ;;  %274 = vmatpush3.msra.mxu1 %v150_v3  ;;  %v147_v9 = vld [vmem:[#allocation7] sm:$0xff]  ;;  %v248_v10 = vld [vmem:[%s438_s2] ss:$0 sm:$0xff]  ;;  %s352_s13 = scalar_lea.vmem %s239_s12, 128  ;;  %p357_p2 = scmp.lt.s32.totalorder %s239_s12, %s239_s12 }
  0x29   :  { %264 = vmatprep.subr.mxu0 %v383_v0  ;;  %275 = vmatprep.subr.mxu1 %v383_v0  ;;  %v250_v15 = vld [vmem:[%s440_s4] ss:$0 sm:$0xff]  ;;  %p353_p1 = scmp.ne.s32.totalorder %s239_s12, %s352_s13  ;;  %p358_p3 = scmp.lt.s32.totalorder %s352_s13, %s352_s13 }
  0x2a   :  { %265 = vmatpush3.msra.mxu0 %v63_v2  ;;  %276 = vmatpush3.msra.mxu1 %v149_v7 }
  0x2b   :  { %266 = vmatprep.subr.mxu0 %v383_v0  ;;  %277 = vmatprep.subr.mxu1 %v383_v0  ;;  %p359_p4 = por %p358_p3, %p357_p2 }
  0x2c   :  { %267 = vmatpush3.msra.mxu0 %v62_v4  ;;  %278 = vmatpush3.msra.mxu1 %v148_v8 }
  0x2d   :  { %268 = vmatprep.subr.mxu0 %v383_v0  ;;  %279 = vmatprep.subr.mxu1 %v383_v0  ;;  %p360_p5 = pnand %p359_p4, %p353_p1 }
  0x2e   :  { %269 = vmatpush3.msra.mxu0 %v61_v5  ;;  %280 = vmatpush3.msra.mxu1 %v147_v9 }
  0x2f   :  { %271 = vmatmul.mubr.msk.f32.vlgmr.msra.gmra.mxu0 %vm72_vm1, %v60_v6 }
  0xef   :  { %v142_v11 = vpop.f32.mrf.mxu0 }
  0xf0   :  { %v143_v12 = vadd.f32 %v248_v10, %v142_v11 }
  0xf1   :  { %v272_v13 = vpop.f32.mrf.mxu0 }
  0xf2   :  { %v146_v14 = vmax.f32 %v143_v12, 0.0 }
  0xf4   :  { %282 = vmatmul.mubr.msk.f32.vlgmr.msra.gmra.mxu1 %vm72_vm1, %v146_v14 }
 0x1b4   :  { %v227_v16 = vpop.f32.mrf.mxu1 }
 0x1b5   :  { %v228_v17 = vadd.f32 %v250_v15, %v227_v16 }
 0x1b6   :  { %v283_v18 = vpop.f32.mrf.mxu1 }
 0x1b7   :  { %231 = vst [vmem:[#allocation8] sm:$0xff] %v228_v17 }
 0x1b8   :  { %363 = shalt.err (!%p360_p5)
}
 0x1b9   :  { %241 = dma.vmem_to_hbm [thread:$0]  %s239_s12, 128, %s441_s5, [#allocation4]  }
 0x1ba   :  { %376 = dma.done.wait [#allocation4], 128  }
 0x1bb   :  { %377 = vsyncadd [#allocation4], 4294967168 }
 0x1bc   :  { %245 = vsyncpa [#allocation3], 1 }
 0x1bd   :  { %246 = vsyncpa [#allocation6], 1 }
 0x1be   :  { %247 = vsyncpa [#allocation4], 1 }

</bundles_post_ra>
